<compile_context>
chip_gen: v6e
topology: v6e:2x2x1
jax: 0.10.0
libtpu: 0.0.40
codegen_flags: <defaults>
</compile_context>

<pallas_src>
import functools

import jax
import jax.numpy as jnp
from jax import lax
from jax.experimental import pallas as pl
from jax.experimental.pallas import tpu as pltpu

_NT = (((1,), (1,)), ((), ()))   # contract lhs dim 1 with rhs dim 1 (rhs "transposed")
_TN = (((1,), (0,)), ((), ()))   # standard (M,K) @ (K,N)


def _mlp_kernel(x_ref, w1_ref, b1_ref, w2_ref, b2_ref, w3_ref, b3_ref, o_ref):
    x = x_ref[...]  # (TB, IN): batch on sublanes, features on lanes (HBM layout)
    # Layer 1: (7, IN) . (TB, IN)^T -> (7, TB). One MXU call moves the batch onto
    # lanes; every following VPU/EUP op and the output store are lane-dense
    # (~16x fewer vregs than the row-major (TB, 7/5/1) layout).
    z1 = lax.dot_general(w1_ref[...], x, _NT, preferred_element_type=jnp.float32)
    h1 = jax.nn.sigmoid(z1 + b1_ref[...])                                  # (7, TB)
    z2 = lax.dot_general(w2_ref[...], h1, _TN, preferred_element_type=jnp.float32)
    h2 = jax.nn.sigmoid(z2 + b2_ref[...])                                  # (5, TB)
    z3 = lax.dot_general(w3_ref[...], h2, _TN, preferred_element_type=jnp.float32)
    o_ref[...] = jax.nn.sigmoid(z3 + b3_ref[...]).astype(o_ref.dtype)      # (1, TB)
    # TODO(synk): if hidden widths ever grow, cast x/weights to bf16 for the MXU
    # (keep f32 accumulation) — irrelevant at the current mem-bound sizes.


def _round_up(n, m):
    return ((n + m - 1) // m) * m


@functools.partial(jax.jit, static_argnames=("block_rows",))
def mlp_forward(x, w1, b1, w2, b2, w3, b3, *, block_rows=1024):
    batch, in_dim = x.shape
    h1_dim, h2_dim, out_dim = w1.shape[0], w2.shape[0], w3.shape[0]

    # Batch tile: multiple of 128 (lane width). At TB=1024 the x tile is 64 KiB
    # (x2 for double-buffering) — tiny vs any generation's VMEM budget.
    tb = min(_round_up(block_rows, 128), _round_up(batch, 128))
    grid = pl.cdiv(batch, tb)
    padded = grid * tb
    if padded != batch:
        x = jnp.pad(x, ((0, padded - batch), (0, 0)))  # pad rows; sliced off below

    const = lambda a: pl.BlockSpec(a.shape, lambda i: (0,) * a.ndim)  # VMEM-resident

    flops = 2 * padded * (in_dim * h1_dim + h1_dim * h2_dim + h2_dim * out_dim)
    transcendentals = padded * (h1_dim + h2_dim + out_dim)
    param_bytes = sum(int(p.size) * p.dtype.itemsize for p in (w1, b1, w2, b2, w3, b3))
    bytes_accessed = padded * (in_dim + out_dim) * 4 + param_bytes

    out_t = pl.pallas_call(
        _mlp_kernel,
        out_shape=jax.ShapeDtypeStruct((out_dim, padded), jnp.float32),
        grid=(grid,),
        in_specs=[
            pl.BlockSpec((tb, in_dim), lambda i: (i, 0)),  # stream x tiles
            const(w1), const(b1), const(w2), const(b2), const(w3), const(b3),
        ],
        out_specs=pl.BlockSpec((out_dim, tb), lambda i: (0, i)),  # lane-dense store
        compiler_params=pltpu.CompilerParams(dimension_semantics=("parallel",)),
        cost_estimate=pl.CostEstimate(
            flops=flops, transcendentals=transcendentals, bytes_accessed=bytes_accessed
        ),
    )(x, w1, b1, w2, b2, w3, b3)

    # (1, padded) -> (batch, 1): metadata-only transpose + slice.
    return out_t.T[:batch]


def init_params(key, input_size):
    """nn.Linear-style U(-1/sqrt(fan_in), 1/sqrt(fan_in)) init, PyTorch (out, in) layout."""
    sizes = [(7, input_size), (5, 7), (1, 5)]
    params = []
    for fan_out, fan_in in sizes:
        key, kw, kb = jax.random.split(key, 3)
        bound = 1.0 / float(fan_in) ** 0.5
        w = jax.random.uniform(kw, (fan_out, fan_in), jnp.float32, -bound, bound)
        b = jax.random.uniform(kb, (fan_out, 1), jnp.float32, -bound, bound)
        params += [w, b]
    return params


def mlp_reference(x, w1, b1, w2, b2, w3, b3):
    h1 = jax.nn.sigmoid(x @ w1.T + b1.T)
    h2 = jax.nn.sigmoid(h1 @ w2.T + b2.T)
    return jax.nn.sigmoid(h2 @ w3.T + b3.T)


if __name__ == "__main__":
    key = jax.random.PRNGKey(0)
    batch, input_size = 300, 16  # non-multiple of the tile -> exercises padding + 3-step grid

    key, kx = jax.random.split(key)
    x = jax.random.normal(kx, (batch, input_size), jnp.float32)
    params = init_params(key, input_size)

    out = mlp_forward(x, *params, block_rows=128)
    jax.block_until_ready(out)

    ref = mlp_reference(x, *params)
    assert out.shape == (batch, 1)
    assert jnp.allclose(out, ref, atol=1e-5, rtol=1e-5), "mismatch vs reference"

    print("KERNEL_OK")
</pallas_src>

<mosaic_0001>
module attributes {stable_mosaic.version = 11 : i64} {
  func.func @_mlp_kernel(%arg0: i32, %arg1: memref<128x16xf32, #tpu.memory_space<vmem>>, %arg2: memref<7x16xf32, #tpu.memory_space<vmem>>, %arg3: memref<7x1xf32, #tpu.memory_space<vmem>>, %arg4: memref<5x7xf32, #tpu.memory_space<vmem>>, %arg5: memref<5x1xf32, #tpu.memory_space<vmem>>, %arg6: memref<1x5xf32, #tpu.memory_space<vmem>>, %arg7: memref<1x1xf32, #tpu.memory_space<vmem>>, %arg8: memref<1x128xf32, #tpu.memory_space<vmem>>) attributes {dimension_semantics = [#tpu.dimension_semantics<parallel>], iteration_bounds = array<i64: 3>, scalar_prefetch = 0 : i64, scratch_operands = 0 : i64, tpu.core_type = #tpu.core_type<tc>, window_params = [{transform_indices = @transform_0, window_bounds = array<i64: 128, 16>}, {pipeline_mode = #tpu.pipeline_mode<synchronous>, transform_indices = @transform_1, window_bounds = array<i64: 7, 16>}, {pipeline_mode = #tpu.pipeline_mode<synchronous>, transform_indices = @transform_2, window_bounds = array<i64: 7, 1>}, {pipeline_mode = #tpu.pipeline_mode<synchronous>, transform_indices = @transform_3, window_bounds = array<i64: 5, 7>}, {pipeline_mode = #tpu.pipeline_mode<synchronous>, transform_indices = @transform_4, window_bounds = array<i64: 5, 1>}, {pipeline_mode = #tpu.pipeline_mode<synchronous>, transform_indices = @transform_5, window_bounds = array<i64: 1, 5>}, {pipeline_mode = #tpu.pipeline_mode<synchronous>, transform_indices = @transform_6, window_bounds = array<i64: 1, 1>}, {transform_indices = @transform_7, window_bounds = array<i64: 1, 128>}]} {
    %c0 = arith.constant 0 : index
    %c0_0 = arith.constant 0 : index
    %0 = vector.load %arg1[%c0, %c0_0] : memref<128x16xf32, #tpu.memory_space<vmem>>, vector<128x16xf32>
    %c0_1 = arith.constant 0 : index
    %c0_2 = arith.constant 0 : index
    %1 = vector.load %arg2[%c0_1, %c0_2] : memref<7x16xf32, #tpu.memory_space<vmem>>, vector<7x16xf32>
    %cst = arith.constant dense<0.000000e+00> : vector<7x128xf32>
    %2 = tpu.matmul %1, %0, %cst {dimension_numbers = #tpu.dot_dimension_numbers<[1], [1], [0], [0], [0, 0, 1, 0], [], []>} : vector<7x16xf32>, vector<128x16xf32>, vector<7x128xf32> -> vector<7x128xf32>
    %c0_3 = arith.constant 0 : index
    %c0_4 = arith.constant 0 : index
    %3 = vector.load %arg3[%c0_3, %c0_4] : memref<7x1xf32, #tpu.memory_space<vmem>>, vector<7x1xf32>
    %4 = vector.broadcast %3 : vector<7x1xf32> to vector<7x128xf32>
    %5 = arith.addf %2, %4 : vector<7x128xf32>
    %6 = arith.negf %5 : vector<7x128xf32>
    %7 = math.exp %6 : vector<7x128xf32>
    %cst_5 = arith.constant 1.000000e+00 : f32
    %8 = vector.broadcast %cst_5 : f32 to vector<7x128xf32>
    %9 = arith.addf %8, %7 : vector<7x128xf32>
    %10 = arith.divf %8, %9 : vector<7x128xf32>
    %c0_6 = arith.constant 0 : index
    %c0_7 = arith.constant 0 : index
    %11 = vector.load %arg4[%c0_6, %c0_7] : memref<5x7xf32, #tpu.memory_space<vmem>>, vector<5x7xf32>
    %cst_8 = arith.constant dense<0.000000e+00> : vector<5x128xf32>
    %12 = tpu.matmul %11, %10, %cst_8 {dimension_numbers = #tpu.dot_dimension_numbers<[1], [0], [0], [1], [0, 0, 1, 1], [], []>} : vector<5x7xf32>, vector<7x128xf32>, vector<5x128xf32> -> vector<5x128xf32>
    %c0_9 = arith.constant 0 : index
    %c0_10 = arith.constant 0 : index
    %13 = vector.load %arg5[%c0_9, %c0_10] : memref<5x1xf32, #tpu.memory_space<vmem>>, vector<5x1xf32>
    %14 = vector.broadcast %13 : vector<5x1xf32> to vector<5x128xf32>
    %15 = arith.addf %12, %14 : vector<5x128xf32>
    %16 = arith.negf %15 : vector<5x128xf32>
    %17 = math.exp %16 : vector<5x128xf32>
    %cst_11 = arith.constant 1.000000e+00 : f32
    %18 = vector.broadcast %cst_11 : f32 to vector<5x128xf32>
    %19 = arith.addf %18, %17 : vector<5x128xf32>
    %20 = arith.divf %18, %19 : vector<5x128xf32>
    %c0_12 = arith.constant 0 : index
    %c0_13 = arith.constant 0 : index
    %21 = vector.load %arg6[%c0_12, %c0_13] : memref<1x5xf32, #tpu.memory_space<vmem>>, vector<1x5xf32>
    %cst_14 = arith.constant dense<0.000000e+00> : vector<1x128xf32>
    %22 = tpu.matmul %21, %20, %cst_14 {dimension_numbers = #tpu.dot_dimension_numbers<[1], [0], [0], [1], [0, 0, 1, 1], [], []>} : vector<1x5xf32>, vector<5x128xf32>, vector<1x128xf32> -> vector<1x128xf32>
    %c0_15 = arith.constant 0 : index
    %c0_16 = arith.constant 0 : index
    %23 = vector.load %arg7[%c0_15, %c0_16] : memref<1x1xf32, #tpu.memory_space<vmem>>, vector<1x1xf32>
    %24 = vector.broadcast %23 : vector<1x1xf32> to vector<1x128xf32>
    %25 = arith.addf %22, %24 : vector<1x128xf32>
    %26 = arith.negf %25 : vector<1x128xf32>
    %27 = math.exp %26 : vector<1x128xf32>
    %cst_17 = arith.constant 1.000000e+00 : f32
    %28 = vector.broadcast %cst_17 : f32 to vector<1x128xf32>
    %29 = arith.addf %28, %27 : vector<1x128xf32>
    %30 = arith.divf %28, %29 : vector<1x128xf32>
    %c0_18 = arith.constant 0 : index
    %c0_19 = arith.constant 0 : index
    %31 = vector.load %arg8[%c0_18, %c0_19] : memref<1x128xf32, #tpu.memory_space<vmem>>, vector<1x128xf32>
    tpu.vector_store %arg8[%c0_18, %c0_19], %30 {strides = array<i32>} : memref<1x128xf32, #tpu.memory_space<vmem>>, vector<1x128xf32>,
    return
  }
  func.func @transform_0(%arg0: i32) -> (i32, i32) {
    %c0_i32 = arith.constant 0 : i32
    %c0_i32_0 = arith.constant 0 : i32
    return %arg0, %c0_i32 : i32, i32
  }
  func.func @transform_1(%arg0: i32) -> (i32, i32) {
    %c0_i32 = arith.constant 0 : i32
    %c0_i32_0 = arith.constant 0 : i32
    %c0_i32_1 = arith.constant 0 : i32
    return %c0_i32, %c0_i32_0 : i32, i32
  }
  func.func @transform_2(%arg0: i32) -> (i32, i32) {
    %c0_i32 = arith.constant 0 : i32
    %c0_i32_0 = arith.constant 0 : i32
    %c0_i32_1 = arith.constant 0 : i32
    return %c0_i32, %c0_i32_0 : i32, i32
  }
  func.func @transform_3(%arg0: i32) -> (i32, i32) {
    %c0_i32 = arith.constant 0 : i32
    %c0_i32_0 = arith.constant 0 : i32
    %c0_i32_1 = arith.constant 0 : i32
    return %c0_i32, %c0_i32_0 : i32, i32
  }
  func.func @transform_4(%arg0: i32) -> (i32, i32) {
    %c0_i32 = arith.constant 0 : i32
    %c0_i32_0 = arith.constant 0 : i32
    %c0_i32_1 = arith.constant 0 : i32
    return %c0_i32, %c0_i32_0 : i32, i32
  }
  func.func @transform_5(%arg0: i32) -> (i32, i32) {
    %c0_i32 = arith.constant 0 : i32
    %c0_i32_0 = arith.constant 0 : i32
    %c0_i32_1 = arith.constant 0 : i32
    return %c0_i32, %c0_i32_0 : i32, i32
  }
  func.func @transform_6(%arg0: i32) -> (i32, i32) {
    %c0_i32 = arith.constant 0 : i32
    %c0_i32_0 = arith.constant 0 : i32
    %c0_i32_1 = arith.constant 0 : i32
    return %c0_i32, %c0_i32_0 : i32, i32
  }
  func.func @transform_7(%arg0: i32) -> (i32, i32) {
    %c0_i32 = arith.constant 0 : i32
    %c0_i32_0 = arith.constant 0 : i32
    return %c0_i32, %arg0 : i32, i32
  }
}

</mosaic_0001>

<bundles_post_ra>
// kernel: mlp_forward.1
= control target key start
LH: loop header
LB: loop body
LE: loop exit
PB: predicated region body
PF: predicated region fallthrough
CT: control target
= control target key end

     0   :  { %s842_s26 = smov 0   ;;  %s938_s0 = inlined_call_operand.vmem [shape: f32[384,16], index: 0, kind: input, shape index: {}]   ;;  %s939_s1 = inlined_call_operand.vmem [shape: f32[7,16], index: 1, kind: input, shape index: {}]   ;;  %s940_s2 = inlined_call_operand.vmem [shape: f32[7,1], index: 2, kind: input, shape index: {}]   ;;  %s941_s3 = inlined_call_operand.vmem [shape: f32[5,7], index: 3, kind: input, shape index: {}]   ;;  %s942_s4 = inlined_call_operand.vmem [shape: f32[5,1], index: 4, kind: input, shape index: {}]   ;;  %s943_s5 = inlined_call_operand.vmem [shape: f32[1,5], index: 5, kind: input, shape index: {}]   ;;  %s944_s6 = inlined_call_operand.<no memory space> [shape: f32[1,1], index: 6, kind: input, shape index: {}]   ;;  %s945_s7 = inlined_call_operand.vmem [shape: f32[1,384], index: 7, kind: output, shape index: {}]  }
   0x1   :  { %v12_v0 = vstv %s944_s6 }
   0x2   :  { %13 = vst [vmem:[#allocation2] sm:$0x1] %v12_v0 }
   0x3 LB: > { %s848_s27 = sadd.s32 4294967295, %s794_s26   ;;  %p668_p0 = scmp.ge.s32.totalorder %s794_s26, 1  ;;  %s794_s26 = sphi %s842_s26, %s19_s26  }
   0x4   : > { %p240_p1 = scmp.lt.s32.totalorder %s794_s26, 4 }
   0x6   : > { %p241_p2 = pnand %p668_p0, %p240_p1 }
   0x7   : > { %s669_s28 = sshll.u32 (!%p241_p2), %s848_s27, 4  ;;  %p276_p4 = scmp.lt.s32.totalorder (!%p241_p2), %s848_s27, 2 }
   0x8   : > { %244 = sbr.rel (%p241_p2) target bundleno = 764 (0x2fc), region = 48  ;;  %p271_p3 = scmp.lt.s32.totalorder (!%p241_p2), %s669_s28, 47 }
   0xd   : > { %v796_v1 = vmov 0.0   ;;  %vm797_vm0 = vmmov 0   ;;  %v296_v2 = vld [vmem:[%s940_s2] sm:$0x7f]  ;;  %v798_v3 = vmov 0   ;;  %s947_s28 = smov (!%p271_p3, %s669_s28), 47  ;;  %v528_v41 = vlaneseq }
   0xe   : > { %718 = vmatprep.subr.mxu0 %v796_v1  ;;  %750 = vmatprep.mubr.msk.f32.mxu0 %vm797_vm0, %v796_v1  ;;  %v431_v4 = vld [vmem:[%s942_s4] sm:$0x1f]  ;;  %s670_s9 = sshll.u32 %s947_s28, 3  ;;  %vm302_vm1 = vcmask 130048   ;;  %vm441_vm2 = vcmask 1046528   ;;  %vm437_vm3 = vcmask 56320  }
   0xf   : > { %774 = vset.pattern.permute.xlu0 %v798_v3  ;;  %753 = vmatprep.subr.mxu1 %v796_v1  ;;  %s868_s12 = scalar_lea.vmem %s938_s0, %s670_s9  ;;  %v295_v21 = vld [vmem:[%s939_s1] sm:$0x7f]  ;;  %vm536_vm4 = vcmask 1044480   ;;  %vm532_vm5 = vcmask 39936   ;;  %v529_v42 = vshrl.u32 %v528_v41, 7  ;;  %s949_s27 = smov (!%p276_p4, %s848_s27), 2 }
  0x10   : > { %299 = vperm.xlu0 %774, %v296_v2   ;;  %755 = vmatprep.mubr.msk.f32.mxu1 %vm797_vm0, %v796_v1  ;;  %v294_v5 = vld [vmem:[%s868_s12 + $0x78] sm:$0xff]  ;;  %v293_v6 = vld [vmem:[%s868_s12 + $0x70] sm:$0xff]  ;;  %v292_v7 = vld [vmem:[%s868_s12 + $0x68] sm:$0xff]  ;;  %s278_s21 = scalar_lea.vmem %s945_s7, %s949_s27 }
  0x11   : > { %775 = vset.pattern.permute.xlu1 %v798_v3  ;;  %719 = vmatpush3.xpose.msk.msra.mxu0 %vm302_vm1, %v294_v5  ;;  %v291_v8 = vld [vmem:[%s868_s12 + $0x60] sm:$0xff]  ;;  %v290_v9 = vld [vmem:[%s868_s12 + $0x58] sm:$0xff]  ;;  %v289_v10 = vld [vmem:[%s868_s12 + $0x50] sm:$0xff]  ;;  %v530_v43 = vsub.s32 0, %v529_v42 }
  0x12   : > { %720 = vmatprep.subr.mxu0 %v796_v1  ;;  %v288_v11 = vld [vmem:[%s868_s12 + $0x48] sm:$0xff]  ;;  %v287_v12 = vld [vmem:[%s868_s12 + $0x40] sm:$0xff]  ;;  %v286_v13 = vld [vmem:[%s868_s12 + $0x38] sm:$0xff] }
  0x13   : > { %v285_v14 = vld [vmem:[%s868_s12 + $0x30] sm:$0xff]  ;;  %v284_v15 = vld [vmem:[%s868_s12 + $0x28] sm:$0xff]  ;;  %v283_v16 = vld [vmem:[%s868_s12 + $0x20] sm:$0xff] }
  0x14   : > { %434 = vperm.xlu0 %774, %v431_v4   ;;  %v282_v17 = vld [vmem:[%s868_s12 + $0x18] sm:$0xff]  ;;  %v281_v18 = vld [vmem:[%s868_s12 + $0x10] sm:$0xff]  ;;  %v280_v19 = vld [vmem:[%s868_s12 + $0x8] sm:$0xff] }
  0x15   : > { %721 = vmatpush3.xpose.msk.msra.mxu0 %vm302_vm1, %v293_v6  ;;  %v279_v20 = vld [vmem:[%s868_s12] sm:$0xff] }
  0x16   : > { %722 = vmatprep.subr.mxu0 %v796_v1  ;;  %v430_v29 = vld [vmem:[%s941_s3] sm:$0x1f] }
  0x17   : > { %v522_v31 = vld [vmem:[#allocation2] sm:$0x1] }
  0x18   : > { %525 = vperm.xlu1 %775, %v522_v31   ;;  %v521_v39 = vld [vmem:[%s943_s5] sm:$0x1] }
  0x19   : > { %723 = vmatpush3.xpose.msk.msra.mxu0 %vm302_vm1, %v292_v7 }
  0x1a   : > { %724 = vmatprep.subr.mxu0 %v796_v1 }
  0x1d   : > { %725 = vmatpush3.xpose.msk.msra.mxu0 %vm302_vm1, %v291_v8 }
  0x1e   : > { %726 = vmatprep.subr.mxu0 %v796_v1 }
  0x21   : > { %727 = vmatpush3.xpose.msk.msra.mxu0 %vm302_vm1, %v290_v9 }
  0x22   : > { %728 = vmatprep.subr.mxu0 %v796_v1 }
  0x25   : > { %729 = vmatpush3.xpose.msk.msra.mxu0 %vm302_vm1, %v289_v10 }
  0x26   : > { %730 = vmatprep.subr.mxu0 %v796_v1 }
  0x29   : > { %731 = vmatpush3.xpose.msk.msra.mxu0 %vm302_vm1, %v288_v11 }
  0x2a   : > { %732 = vmatprep.subr.mxu0 %v796_v1 }
  0x2d   : > { %733 = vmatpush3.xpose.msk.msra.mxu0 %vm302_vm1, %v287_v12 }
  0x2e   : > { %734 = vmatprep.subr.mxu0 %v796_v1 }
  0x31   : > { %735 = vmatpush3.xpose.msk.msra.mxu0 %vm302_vm1, %v286_v13 }
  0x32   : > { %736 = vmatprep.subr.mxu0 %v796_v1 }
  0x35   : > { %737 = vmatpush3.xpose.msk.msra.mxu0 %vm302_vm1, %v285_v14 }
  0x36   : > { %738 = vmatprep.subr.mxu0 %v796_v1 }
  0x39   : > { %739 = vmatpush3.xpose.msk.msra.mxu0 %vm302_vm1, %v284_v15 }
  0x3a   : > { %740 = vmatprep.subr.mxu0 %v796_v1 }
  0x3d   : > { %741 = vmatpush3.xpose.msk.msra.mxu0 %vm302_vm1, %v283_v16 }
  0x3e   : > { %742 = vmatprep.subr.mxu0 %v796_v1 }
  0x41   : > { %743 = vmatpush3.xpose.msk.msra.mxu0 %vm302_vm1, %v282_v17 }
  0x42   : > { %744 = vmatprep.subr.mxu0 %v796_v1 }
  0x45   : > { %745 = vmatpush3.xpose.msk.msra.mxu0 %vm302_vm1, %v281_v18 }
  0x46   : > { %746 = vmatprep.subr.mxu0 %v796_v1 }
  0x49   : > { %747 = vmatpush3.xpose.msk.msra.mxu0 %vm302_vm1, %v280_v19 }
  0x4a   : > { %748 = vmatprep.subr.mxu0 %v796_v1 }
  0x4d   : > { %749 = vmatpush3.xpose.msk.msra.mxu0 %vm302_vm1, %v279_v20 }
  0x50   : > { %751 = vmatmul.mubr.msk.f32.vlgmr.msra.gmra.mxu0 %vm302_vm1, %v295_v21 }
  0x8b   : > { %v300_v22 = vpop.permute.xlu0 %299 }
  0x8f   : > { %v435_v32 = vpop.permute.xlu0 %434 }
  0x93   : > { %v526_v44 = vpop.permute.xlu1 %525 }
  0x94   : > { %v531_v45 = vrot.slane %v526_v44, %v530_v43 }
 0x110   : > { %v420_v23 = vpop.f32.mrf.mxu0 }
 0x111   : > { %v421_v24 = vadd.f32 %v420_v23, %v300_v22 }
 0x112   : > { %v752_v25 = vpop.f32.mrf.mxu0 }
 0x113   : > { %v688_v26 = vmul.f32 -1.442695, %v421_v24 }
 0x115   : > { %776 = vpow2.f32 %v688_v26 }
 0x122   : > { %v777_v27 = vpop.eup %776 }
 0x123   : > { %v427_v28 = vadd.f32 1.0, %v777_v27 }
 0x125   : > { %778 = vrcp.f32 %v427_v28 }
 0x132   : > { %v779_v30 = vpop.eup %778 }
 0x133   : > { %754 = vmatpush3.msk.msra.mxu1 %vm441_vm2, %v779_v30 }
 0x134   : > { %756 = vmatmul.mubr.msk.f32.vlgmr.msra.gmra.mxu1 %vm437_vm3, %v430_v29  ;;  %758 = vmatprep.subr.mxu1 %v796_v1 }
 0x135   : > { %760 = vmatprep.mubr.msk.f32.mxu1 %vm797_vm0, %v796_v1 }
 0x1f4   : > { %v511_v33 = vpop.f32.mrf.mxu1 }
 0x1f5   : > { %v512_v34 = vadd.f32 %v511_v33, %v435_v32 }
 0x1f6   : > { %v757_v35 = vpop.f32.mrf.mxu1 }
 0x1f7   : > { %v691_v36 = vmul.f32 -1.442695, %v512_v34 }
 0x1f9   : > { %780 = vpow2.f32 %v691_v36 }
 0x206   : > { %v781_v37 = vpop.eup %780 }
 0x207   : > { %v518_v38 = vadd.f32 1.0, %v781_v37 }
 0x209   : > { %782 = vrcp.f32 %v518_v38 }
 0x216   : > { %v783_v40 = vpop.eup %782 }
 0x217   : > { %759 = vmatpush3.msk.msra.mxu1 %vm536_vm4, %v783_v40 }
 0x218   : > { %761 = vmatmul.mubr.msk.f32.vlgmr.msra.gmra.mxu1 %vm532_vm5, %v521_v39 }
 0x2d8   : > { %v606_v46 = vpop.f32.mrf.mxu1 }
 0x2d9   : > { %v607_v47 = vadd.f32 %v606_v46, %v531_v45 }
 0x2da   : > { %v762_v48 = vpop.f32.mrf.mxu1 }
 0x2db   : > { %v694_v49 = vmul.f32 -1.442695, %v607_v47 }
 0x2dd   : > { %784 = vpow2.f32 %v694_v49 }
 0x2ea   : > { %v785_v50 = vpop.eup %784 }
 0x2eb   : > { %v613_v51 = vadd.f32 1.0, %v785_v50 }
 0x2ed   : > { %786 = vrcp.f32 %v613_v51 }
 0x2fa   : > { %v787_v52 = vpop.eup %786 }
 0x2fb   : > { %616 = vst [vmem:[%s278_s21] sm:$0x1] %v787_v52 }
 0x2fc PF: > { %s19_s26 = sadd.s32 1, %s794_s26  }
 0x2fd   : > { %p16_p5 = scmp.ge.s32.totalorder %s19_s26, 5  }
 0x2ff   :  { %18 = sbr.rel (!%p16_p5) target bundleno = 3 (0x3), region = 78 }

</bundles_post_ra>
